<compile_context>
chip_gen: v5e
topology: v5e:2x2
jax: 0.10.0
libtpu: 0.0.40
codegen_flags: <defaults>
</compile_context>

<pallas_src>
import functools

import jax
import jax.numpy as jnp
from jax import lax
from jax.experimental import pallas as pl
from jax.experimental.pallas import tpu as pltpu


def _tile(dim: int, target: int) -> int:
    """Largest tile size <= target that evenly divides dim."""
    if dim <= target:
        return dim
    for t in range(target, 0, -1):
        if dim % t == 0:
            return t
    return dim


# ---------------------------------------------------------------------------
# Tiled matmul kernel (wq / wk / wv / wo projections).
# ---------------------------------------------------------------------------
def _matmul_kernel(a_ref, b_ref, o_ref, acc_ref):
    @pl.when(pl.program_id(2) == 0)
    def _():
        acc_ref[...] = jnp.zeros_like(acc_ref)

    acc_ref[...] += jnp.dot(
        a_ref[...].astype(jnp.float32),
        b_ref[...].astype(jnp.float32),
        preferred_element_type=jnp.float32,
    )

    @pl.when(pl.program_id(2) == pl.num_programs(2) - 1)
    def _():
        o_ref[...] = acc_ref[...].astype(o_ref.dtype)


def linear(x2d, w):
    """y = x2d @ w.T with torch-style weight layout w: [out_features, in_features]."""
    m, k = x2d.shape
    n = w.shape[0]
    wt = w.T  # [K, N]
    tm = _tile(m, 256)
    tn = _tile(n, 256)
    tk = _tile(k, 512)
    return pl.pallas_call(
        _matmul_kernel,
        out_shape=jax.ShapeDtypeStruct((m, n), x2d.dtype),
        grid=(m // tm, n // tn, k // tk),
        in_specs=[
            pl.BlockSpec((tm, tk), lambda i, j, kk: (i, kk)),
            pl.BlockSpec((tk, tn), lambda i, j, kk: (kk, j)),
        ],
        out_specs=pl.BlockSpec((tm, tn), lambda i, j, kk: (i, j)),
        scratch_shapes=[pltpu.VMEM((tm, tn), jnp.float32)],
        compiler_params=pltpu.CompilerParams(
            dimension_semantics=("parallel", "parallel", "arbitrary")
        ),
    )(x2d, wt)


# ---------------------------------------------------------------------------
# Fused RoPE + causal flash-attention kernel (online softmax, GQA via index_map).
# ---------------------------------------------------------------------------
def _flash_rope_attn_kernel(
    q_ref, k_ref, v_ref, cosq_ref, sinq_ref, cosk_ref, sink_ref, rot_ref,
    o_ref, qr_sc, m_sc, l_sc, acc_sc, *, scale,
):
    qi = pl.program_id(2)
    ki = pl.program_id(3)
    tq = q_ref.shape[0]
    tk = k_ref.shape[0]

    q_start = qi * tq
    k_start = ki * tk

    @pl.when(ki == 0)
    def _():
        # RoPE on this q tile, once per (b, h, qi). rotate_half(x) == x @ R.
        qv = q_ref[...].astype(jnp.float32)
        rot = rot_ref[...].astype(jnp.float32)
        qr_sc[...] = (
            qv * cosq_ref[...].astype(jnp.float32)
            + jnp.dot(qv, rot, preferred_element_type=jnp.float32)
            * sinq_ref[...].astype(jnp.float32)
        )
        m_sc[...] = jnp.full_like(m_sc, -jnp.inf)
        l_sc[...] = jnp.zeros_like(l_sc)
        acc_sc[...] = jnp.zeros_like(acc_sc)

    # Skip compute for k tiles that are entirely in the (causal) future.
    @pl.when(k_start <= q_start + tq - 1)
    def _():
        rot = rot_ref[...].astype(jnp.float32)
        kv = k_ref[...].astype(jnp.float32)
        kr = (
            kv * cosk_ref[...].astype(jnp.float32)
            + jnp.dot(kv, rot, preferred_element_type=jnp.float32)
            * sink_ref[...].astype(jnp.float32)
        )
        s = lax.dot_general(
            qr_sc[...], kr, (((1,), (1,)), ((), ())),
            preferred_element_type=jnp.float32,
        ) * scale
        q_pos = q_start + lax.broadcasted_iota(jnp.int32, (tq, tk), 0)
        k_pos = k_start + lax.broadcasted_iota(jnp.int32, (tq, tk), 1)
        s = jnp.where(q_pos >= k_pos, s, -jnp.inf)

        m_prev = m_sc[...]
        m_new = jnp.maximum(m_prev, s.max(axis=-1, keepdims=True))
        alpha = jnp.exp(m_prev - m_new)
        p = jnp.exp(s - m_new)
        l_sc[...] = alpha * l_sc[...] + p.sum(axis=-1, keepdims=True)
        acc_sc[...] = alpha * acc_sc[...] + jnp.dot(
            p, v_ref[...].astype(jnp.float32), preferred_element_type=jnp.float32
        )
        m_sc[...] = m_new

    @pl.when(ki == pl.num_programs(3) - 1)
    def _():
        o_ref[...] = (acc_sc[...] / l_sc[...]).astype(o_ref.dtype)


def attention_forward(x, wq, wk, wv, wo, freqs_cos, freqs_sin, *, n_heads, n_kv_heads):
    """Attention.forward (use_kv_cache=False path).

    x:          [B, S, dim]
    wq/wk/wv/wo: torch-layout weights [out_features, in_features]
    freqs_cos/freqs_sin: [S, head_dim] (HF-style full-width tables).
    """
    B, S, dim = x.shape
    head_dim = dim // n_heads
    assert head_dim % 2 == 0
    n_rep = n_heads // n_kv_heads

    x2d = x.reshape(B * S, dim)
    q = linear(x2d, wq).reshape(B, S, n_heads, head_dim)
    k = linear(x2d, wk).reshape(B, S, n_kv_heads, head_dim)
    v = linear(x2d, wv).reshape(B, S, n_kv_heads, head_dim)

    q = jnp.transpose(q, (0, 2, 1, 3))  # [B, H,  S, D]
    k = jnp.transpose(k, (0, 2, 1, 3))  # [B, Hk, S, D]
    v = jnp.transpose(v, (0, 2, 1, 3))  # [B, Hk, S, D]

    # Index-prep glue (matches apply_rotary_emb):
    #   cos[..., :D//2].repeat_interleave(2, -1), kept in the input dtype,
    #   shared across batch and heads (shape [S, D]).
    half = head_dim // 2
    cos = jnp.repeat(freqs_cos[:, :half], 2, axis=-1).astype(x.dtype)
    sin = jnp.repeat(freqs_sin[:, :half], 2, axis=-1).astype(x.dtype)

    # Signed permutation matrix so rotate_half(x) == x @ R.
    j = jnp.arange(head_dim)
    o = jnp.arange(head_dim)
    plus = ((j[:, None] % 2 == 0) & (o[None, :] == j[:, None] + 1)).astype(jnp.float32)
    minus = ((j[:, None] % 2 == 1) & (o[None, :] == j[:, None] - 1)).astype(jnp.float32)
    rot = plus - minus  # [D, D]

    TQ = _tile(S, 256)
    TK = _tile(S, 256)
    num_q = S // TQ
    num_k = S // TK
    scale = 1.0 / (head_dim ** 0.5)

    attn = pl.pallas_call(
        functools.partial(_flash_rope_attn_kernel, scale=scale),
        out_shape=jax.ShapeDtypeStruct((B, n_heads, S, head_dim), x.dtype),
        grid=(B, n_heads, num_q, num_k),
        in_specs=[
            pl.BlockSpec((None, None, TQ, head_dim), lambda b, h, qi, ki: (b, h, qi, 0)),
            pl.BlockSpec((None, None, TK, head_dim),
                         lambda b, h, qi, ki: (b, h // n_rep, ki, 0)),
            pl.BlockSpec((None, None, TK, head_dim),
                         lambda b, h, qi, ki: (b, h // n_rep, ki, 0)),
            pl.BlockSpec((TQ, head_dim), lambda b, h, qi, ki: (qi, 0)),
            pl.BlockSpec((TQ, head_dim), lambda b, h, qi, ki: (qi, 0)),
            pl.BlockSpec((TK, head_dim), lambda b, h, qi, ki: (ki, 0)),
            pl.BlockSpec((TK, head_dim), lambda b, h, qi, ki: (ki, 0)),
            pl.BlockSpec((head_dim, head_dim), lambda b, h, qi, ki: (0, 0)),
        ],
        out_specs=pl.BlockSpec((None, None, TQ, head_dim),
                               lambda b, h, qi, ki: (b, h, qi, 0)),
        scratch_shapes=[
            pltpu.VMEM((TQ, head_dim), jnp.float32),  # RoPE'd q tile
            pltpu.VMEM((TQ, 1), jnp.float32),         # running max
            pltpu.VMEM((TQ, 1), jnp.float32),         # running denom
            pltpu.VMEM((TQ, head_dim), jnp.float32),  # output accumulator
        ],
        compiler_params=pltpu.CompilerParams(
            dimension_semantics=("parallel", "parallel", "parallel", "arbitrary"),
            vmem_limit_bytes=32 * 1024 * 1024,  # raise v5e's 16 MiB scoped default
        ),
    )(q, k, v, cos, sin, cos, sin, rot)

    out = jnp.transpose(attn, (0, 2, 1, 3)).reshape(B * S, n_heads * head_dim)
    return linear(out, wo).reshape(B, S, dim)


# ---------------------------------------------------------------------------
# Pure-JAX reference (mirrors the PyTorch module) for correctness checking.
# ---------------------------------------------------------------------------
def _reference_attention(x, wq, wk, wv, wo, freqs_cos, freqs_sin, n_heads, n_kv_heads):
    B, S, dim = x.shape
    D = dim // n_heads
    n_rep = n_heads // n_kv_heads

    q = (x.reshape(B * S, dim) @ wq.T).reshape(B, S, n_heads, D)
    k = (x.reshape(B * S, dim) @ wk.T).reshape(B, S, n_kv_heads, D)
    v = (x.reshape(B * S, dim) @ wv.T).reshape(B, S, n_kv_heads, D)

    cos = jnp.repeat(freqs_cos[:, : D // 2], 2, axis=-1)[None, :, None, :]
    sin = jnp.repeat(freqs_sin[:, : D // 2], 2, axis=-1)[None, :, None, :]

    def rotate_half(xx):
        x1 = xx[..., 0::2]
        x2 = xx[..., 1::2]
        return jnp.stack((-x2, x1), axis=-1).reshape(xx.shape)

    qf = q.astype(jnp.float32)
    kf = k.astype(jnp.float32)
    q = (qf * cos + rotate_half(qf) * sin).astype(q.dtype)
    k = (kf * cos + rotate_half(kf) * sin).astype(k.dtype)

    q = jnp.transpose(q, (0, 2, 1, 3))
    k = jnp.transpose(k, (0, 2, 1, 3))
    v = jnp.transpose(v, (0, 2, 1, 3))
    k = jnp.repeat(k, n_rep, axis=1)
    v = jnp.repeat(v, n_rep, axis=1)

    mask = jnp.tril(jnp.ones((S, S), dtype=bool))
    s = jnp.einsum("bhqd,bhkd->bhqk", q, k).astype(jnp.float32) / jnp.sqrt(
        jnp.float32(D)
    )
    s = jnp.where(mask[None, None], s, -jnp.inf)
    p = jax.nn.softmax(s, axis=-1).astype(x.dtype)
    o = jnp.einsum("bhqk,bhkd->bhqd", p, v)
    o = jnp.transpose(o, (0, 2, 1, 3)).reshape(B, S, n_heads * D)
    return o @ wo.T


if __name__ == "__main__":
    B, S = 2, 8
    n_heads, n_kv_heads = 4, 2
    head_dim = 16
    dim = n_heads * head_dim  # 64

    key = jax.random.PRNGKey(0)
    kx, kq, kk_, kv_, ko = jax.random.split(key, 5)
    x = jax.random.normal(kx, (B, S, dim), dtype=jnp.float32)
    wq = jax.random.normal(kq, (n_heads * head_dim, dim), dtype=jnp.float32) * dim**-0.5
    wk = jax.random.normal(kk_, (n_kv_heads * head_dim, dim), dtype=jnp.float32) * dim**-0.5
    wv = jax.random.normal(kv_, (n_kv_heads * head_dim, dim), dtype=jnp.float32) * dim**-0.5
    wo = jax.random.normal(ko, (dim, n_heads * head_dim), dtype=jnp.float32) * dim**-0.5

    # precompute_freqs_cis(head_dim, S, theta=10000.0)
    inv_freq = 1.0 / (
        10000.0 ** (jnp.arange(0, head_dim, 2, dtype=jnp.float32) / head_dim)
    )
    t = jnp.arange(S, dtype=jnp.float32)
    ang = jnp.outer(t, inv_freq)
    emb = jnp.concatenate([ang, ang], axis=-1)  # [S, head_dim]
    freqs_cos = jnp.cos(emb)
    freqs_sin = jnp.sin(emb)

    out = attention_forward(
        x, wq, wk, wv, wo, freqs_cos, freqs_sin,
        n_heads=n_heads, n_kv_heads=n_kv_heads,
    )
    jax.block_until_ready(out)

    ref = _reference_attention(
        x, wq, wk, wv, wo, freqs_cos, freqs_sin, n_heads, n_kv_heads
    )
    assert out.shape == (B, S, dim)
    max_err = float(jnp.max(jnp.abs(out - ref)))
    assert jnp.allclose(out, ref, atol=1e-3, rtol=1e-3), f"max abs err {max_err}"

    print("KERNEL_OK")
</pallas_src>

<mosaic_0001>
module attributes {stable_mosaic.version = 11 : i64} {
  func.func @_matmul_kernel(%arg0: i32, %arg1: i32, %arg2: i32, %arg3: memref<16x64xf32, #tpu.memory_space<vmem>>, %arg4: memref<64x64xf32, #tpu.memory_space<vmem>>, %arg5: memref<16x64xf32, #tpu.memory_space<vmem>>, %arg6: memref<16x64xf32, #tpu.memory_space<vmem>>) attributes {dimension_semantics = [#tpu.dimension_semantics<parallel>, #tpu.dimension_semantics<parallel>, #tpu.dimension_semantics<arbitrary>], iteration_bounds = array<i64: 1, 1, 1>, scalar_prefetch = 0 : i64, scratch_operands = 1 : i64, tpu.core_type = #tpu.core_type<tc>, window_params = [{transform_indices = @transform_0, window_bounds = array<i64: 16, 64>}, {transform_indices = @transform_1, window_bounds = array<i64: 64, 64>}, {transform_indices = @transform_2, window_bounds = array<i64: 16, 64>}]} {
    %c0_i32 = arith.constant 0 : i32
    %0 = arith.cmpi eq, %arg2, %c0_i32 : i32
    %1 = arith.extui %0 : i1 to i32
    %c0_i32_0 = arith.constant 0 : i32
    %2 = arith.cmpi ne, %1, %c0_i32_0 : i32
    scf.if %2 {
      %cst_10 = arith.constant 0.000000e+00 : f32
      %12 = vector.broadcast %cst_10 : f32 to vector<16x64xf32>
      %c0_11 = arith.constant 0 : index
      %c0_12 = arith.constant 0 : index
      %13 = vector.load %arg6[%c0_11, %c0_12] : memref<16x64xf32, #tpu.memory_space<vmem>>, vector<16x64xf32>
      tpu.vector_store %arg6[%c0_11, %c0_12], %12 {strides = array<i32>} : memref<16x64xf32, #tpu.memory_space<vmem>>, vector<16x64xf32>,
    } else {
    }
    %c0 = arith.constant 0 : index
    %c0_1 = arith.constant 0 : index
    %3 = vector.load %arg6[%c0, %c0_1] : memref<16x64xf32, #tpu.memory_space<vmem>>, vector<16x64xf32>
    %c0_2 = arith.constant 0 : index
    %c0_3 = arith.constant 0 : index
    %4 = vector.load %arg3[%c0_2, %c0_3] : memref<16x64xf32, #tpu.memory_space<vmem>>, vector<16x64xf32>
    %c0_4 = arith.constant 0 : index
    %c0_5 = arith.constant 0 : index
    %5 = vector.load %arg4[%c0_4, %c0_5] : memref<64x64xf32, #tpu.memory_space<vmem>>, vector<64x64xf32>
    %cst = arith.constant dense<0.000000e+00> : vector<16x64xf32>
    %6 = tpu.matmul %4, %5, %cst {dimension_numbers = #tpu.dot_dimension_numbers<[1], [0], [0], [1], [0, 0, 1, 1], [], []>} : vector<16x64xf32>, vector<64x64xf32>, vector<16x64xf32> -> vector<16x64xf32>
    %7 = arith.addf %3, %6 : vector<16x64xf32>
    %c0_6 = arith.constant 0 : index
    %c0_7 = arith.constant 0 : index
    %8 = vector.load %arg6[%c0_6, %c0_7] : memref<16x64xf32, #tpu.memory_space<vmem>>, vector<16x64xf32>
    tpu.vector_store %arg6[%c0_6, %c0_7], %7 {strides = array<i32>} : memref<16x64xf32, #tpu.memory_space<vmem>>, vector<16x64xf32>,
    %c0_i32_8 = arith.constant 0 : i32
    %9 = arith.cmpi eq, %arg2, %c0_i32_8 : i32
    %10 = arith.extui %9 : i1 to i32
    %c0_i32_9 = arith.constant 0 : i32
    %11 = arith.cmpi ne, %10, %c0_i32_9 : i32
    scf.if %11 {
      %c0_10 = arith.constant 0 : index
      %c0_11 = arith.constant 0 : index
      %12 = vector.load %arg6[%c0_10, %c0_11] : memref<16x64xf32, #tpu.memory_space<vmem>>, vector<16x64xf32>
      %c0_12 = arith.constant 0 : index
      %c0_13 = arith.constant 0 : index
      %13 = vector.load %arg5[%c0_12, %c0_13] : memref<16x64xf32, #tpu.memory_space<vmem>>, vector<16x64xf32>
      tpu.vector_store %arg5[%c0_12, %c0_13], %12 {strides = array<i32>} : memref<16x64xf32, #tpu.memory_space<vmem>>, vector<16x64xf32>,
    } else {
    }
    return
  }
  func.func @transform_0(%arg0: i32, %arg1: i32, %arg2: i32) -> (i32, i32) {
    %c0_i32 = arith.constant 0 : i32
    return %arg0, %arg2 : i32, i32
  }
  func.func @transform_1(%arg0: i32, %arg1: i32, %arg2: i32) -> (i32, i32) {
    %c0_i32 = arith.constant 0 : i32
    return %arg2, %arg1 : i32, i32
  }
  func.func @transform_2(%arg0: i32, %arg1: i32, %arg2: i32) -> (i32, i32) {
    %c0_i32 = arith.constant 0 : i32
    return %arg0, %arg1 : i32, i32
  }
}

</mosaic_0001>

<bundles_post_ra>
// kernel: tpu_custom_call.1
= control target key start
LH: loop header
LB: loop body
LE: loop exit
PB: predicated region body
PF: predicated region fallthrough
CT: control target
= control target key end

     0   :  { %7 = vsyncpa [#allocation4], 0  ;;  %s265_s0 = inlined_call_operand.hbm [shape: f32[16,64], index: 0, kind: input, shape index: {}]   ;;  %s266_s1 = inlined_call_operand.hbm [shape: f32[64,64], index: 1, kind: input, shape index: {}]   ;;  %s267_s2 = inlined_call_operand.hbm [shape: f32[16,64], index: 2, kind: output, shape index: {}]  }
   0x1   :  { %8 = vsyncpa [#allocation7], 0 }
   0x2   :  { %9 = vsyncpa [#allocation5], 0  ;;  %s14_s11 = sshll.u32 %s265_s0, 4  ;;  %s218_s12 = smov [#allocation3]   ;;  %s15_s11 = int_to_ptr.hbm [resolvable:$true] %s14_s11 }
   0x3   :  { %s16_s13 = sshll.u32 %s218_s12, 4  ;;  %s27_s16 = sshll.u32 %s266_s1, 4  ;;  %s17_s13 = int_to_ptr.vmem [resolvable:$true] %s16_s13  ;;  %s28_s16 = int_to_ptr.hbm [resolvable:$true] %s27_s16 }
   0x4   :  { %s219_s17 = smov 128   ;;  %s220_s18 = smov 8  }
   0x5   :  { %22 = dma.hbm_to_vmem [thread:$0]  %s15_s11, 256, %s17_s13, [#allocation4], %s219_s17, %s219_s17, %s220_s18  }
   0x6   :  { %s221_s19 = smov [#allocation6]  }
   0x7   :  { %s29_s20 = sshll.u32 %s221_s19, 4  ;;  %s30_s20 = int_to_ptr.vmem [resolvable:$true] %s29_s20 }
   0x8   :  { %35 = dma.hbm_to_vmem [thread:$0]  %s28_s16, 1024, %s30_s20, [#allocation7], %s219_s17, %s219_s17, %s220_s18  }
   0x9   :  { %212 = dma.done.wait [#allocation4], 256  }
   0xa   :  { %213 = vsyncadd [#allocation4], 4294967040 }
   0xb   :  { %214 = dma.done.wait [#allocation7], 1024  }
   0xc   :  { %215 = vsyncadd [#allocation7], 4294966272  ;;  %vm48_vm0 = vcmask 523264   ;;  %v222_v0 = vmov 0.0   ;;  %v62_v1 = vld [vmem:[#allocation6 + $0x38] sm:$0xff]  ;;  %v61_v2 = vld [vmem:[#allocation6 + $0x30] sm:$0xff] }
   0xd   :  { %49 = vst.msk [vmem:[#allocation2] sm:$0xff] %vm48_vm0, %v222_v0  ;;  %78 = vmatpush.msra.mxu0 %v62_v1  ;;  %126 = vmatpush.msra.mxu1 %v62_v1  ;;  %v60_v3 = vld [vmem:[#allocation6 + $0x28] sm:$0xff]  ;;  %v59_v4 = vld [vmem:[#allocation6 + $0x20] sm:$0xff]  ;;  %v58_v5 = vld [vmem:[#allocation6 + $0x18] sm:$0xff]  ;;  %s223_s0 = smov [#allocation8]   ;;  %s110_s23 = sshll.u32 %s267_s2, 4  ;;  %s111_s23 = int_to_ptr.hbm [resolvable:$true] %s110_s23 }
   0xe   :  { %50 = vst.msk [vmem:[#allocation2 + $0x8] sm:$0xff] %vm48_vm0, %v222_v0  ;;  %v57_v6 = vld [vmem:[#allocation6 + $0x10] sm:$0xff]  ;;  %v56_v7 = vld [vmem:[#allocation6 + $0x8] sm:$0xff]  ;;  %v55_v8 = vld [vmem:[#allocation6] sm:$0xff]  ;;  %s108_s1 = sshll.u32 %s223_s0, 4  ;;  %s109_s1 = int_to_ptr.vmem [resolvable:$true] %s108_s1 }
   0xf   :  { %79 = vmatpush.msra.mxu0 %v61_v2  ;;  %127 = vmatpush.msra.mxu1 %v61_v2  ;;  %v53_v9 = vld [vmem:[#allocation3] sm:$0xff]  ;;  %v54_v10 = vld [vmem:[#allocation3 + $0x8] sm:$0xff] }
  0x11   :  { %80 = vmatpush.msra.mxu0 %v60_v3  ;;  %128 = vmatpush.msra.mxu1 %v60_v3 }
  0x13   :  { %81 = vmatpush.msra.mxu0 %v59_v4  ;;  %129 = vmatpush.msra.mxu1 %v59_v4 }
  0x14   :  { %v51_v11 = vld [vmem:[#allocation2] sm:$0xff] }
  0x15   :  { %82 = vmatpush.msra.mxu0 %v58_v5  ;;  %130 = vmatpush.msra.mxu1 %v58_v5  ;;  %v52_v12 = vld [vmem:[#allocation2 + $0x8] sm:$0xff] }
  0x17   :  { %83 = vmatpush.msra.mxu0 %v57_v6  ;;  %131 = vmatpush.msra.mxu1 %v57_v6 }
  0x19   :  { %84 = vmatpush.msra.mxu0 %v56_v7  ;;  %132 = vmatpush.msra.mxu1 %v56_v7 }
  0x1b   :  { %85 = vmatpush.msra.mxu0 %v55_v8  ;;  %133 = vmatpush.msra.mxu1 %v55_v8 }
  0x1c   :  { %124 = vmatmul.msk.f32.vlgmr.msra.gmra.mxu0 %vm48_vm0, %v53_v9  ;;  %125 = vmatmul.msk.f32.vlgmr.msra.gmra.mxu1 %vm48_vm0, %v54_v10 }
  0x99   :  { %v87_v13 = vpop.f32.mrf.mxu0  ;;  %v90_v14 = vpop.f32.mrf.mxu1 }
  0x9a   :  { %v93_v15 = vadd.f32 %v87_v13, %v51_v11  ;;  %v94_v16 = vadd.f32 %v90_v14, %v52_v12 }
  0x9c   :  { %95 = vst.msk [vmem:[#allocation2] sm:$0xff] %vm48_vm0, %v93_v15 }
  0x9d   :  { %96 = vst.msk [vmem:[#allocation2 + $0x8] sm:$0xff] %vm48_vm0, %v94_v16 }
  0xa3   :  { %v100_v17 = vld [vmem:[#allocation2] sm:$0xff] }
  0xa4   :  { %v101_v18 = vld [vmem:[#allocation2 + $0x8] sm:$0xff]  ;;  %102 = vst.msk [vmem:[#allocation8] sm:$0xff] %vm48_vm0, %v100_v17 }
  0xa5   :  { %103 = vst.msk [vmem:[#allocation8 + $0x8] sm:$0xff] %vm48_vm0, %v101_v18 }
  0xa6   :  { %116 = dma.vmem_to_hbm [thread:$0]  %s109_s1, 256, %s111_s23, [#allocation5], %s219_s17, %s219_s17, %s220_s18  }
  0xa7   :  { %216 = dma.done.wait [#allocation5], 256  }
  0xa8   :  { %217 = vsyncadd [#allocation5], 4294967040 }
  0xa9   :  { %121 = vsyncpa [#allocation4], 1 }
  0xaa   :  { %122 = vsyncpa [#allocation7], 1 }
  0xab   :  { %123 = vsyncpa [#allocation5], 1 }

</bundles_post_ra>
